<compile_context>
chip_gen: v5e
topology: v5e:2x2
jax: 0.10.0
libtpu: 0.0.40
codegen_flags: <defaults>
</compile_context>

<pallas_src>
import functools
import random

import jax
import jax.numpy as jnp
import numpy as np
from jax.experimental import pallas as pl
from jax.experimental.pallas import tpu as pltpu


def _sublane_tile(dtype):
    """Rows per (sublane) tile: 8 for 4-byte, 16 for 2-byte, 32 for 1-byte."""
    return max(8, 32 // jnp.dtype(dtype).itemsize)


def _padded_vmem_bytes_2d(rows, cols, dtype):
    """VMEM bytes of one (rows, cols) buffer under dtype-aware (sub, 128) tiling."""
    itemsize = jnp.dtype(dtype).itemsize
    st = _sublane_tile(dtype)
    rows_p = -(-rows // st) * st
    cols_p = -(-cols // 128) * 128
    return rows_p * cols_p * itemsize


def _vmem_budget_bytes():
    """Generation-aware budget: ~75% of physical VMEM.

    v5e/v6e (128 MiB) -> 96 MiB, v7x (64 MiB) -> 48 MiB.  Falls back to a
    conservative 64 MiB capacity if the query is unavailable.
    """
    cap = 64 * 1024 * 1024
    try:
        cap = int(pltpu.get_tpu_info().vmem_capacity_bytes)
    except Exception:
        pass
    return (3 * cap) // 4


def _whole_image_kernel(src_ref, im_hbm, out_hbm, im_vmem, out_vmem, sem,
                        *, num_patch, patch_rows, patch_cols):
    """Single grid step: one contiguous DMA in, one out, single-buffered.

    All slice offsets below are static Python ints; the runtime shuffle index
    src[i] only feeds scalar selects, so no dynamic sublane/lane slicing is
    needed (safe for any dtype / patch_size).  Total VMEM reads equal one
    image (num_patch^2 blocks of size patch x patch), which is trivial
    compared to the HBM traffic.
    """
    cp_in = pltpu.make_async_copy(im_hbm, im_vmem, sem.at[0])
    cp_in.start()
    cp_in.wait()

    out_vmem[...] = jnp.zeros_like(out_vmem)

    for i in range(num_patch):            # destination diagonal patch (static)
        s = src_ref[i]                    # source diagonal patch (dynamic scalar)
        acc = im_vmem[0:patch_rows, 0:patch_cols]
        for cand in range(1, num_patch):  # select-tree over source candidates
            blk = im_vmem[cand * patch_rows:(cand + 1) * patch_rows,
                          cand * patch_cols:(cand + 1) * patch_cols]
            acc = jnp.where(s == cand, blk, acc)
        out_vmem[i * patch_rows:(i + 1) * patch_rows,
                 i * patch_cols:(i + 1) * patch_cols] = acc

    cp_out = pltpu.make_async_copy(out_vmem, out_hbm, sem.at[1])
    cp_out.start()
    cp_out.wait()


def _patch_row_kernel(src_ref, row_ref, out_ref, *, num_patch, patch_cols):
    """Grid step i produces one full destination patch-row (lane-dense).

    row_ref is the FULL source patch-row (patch_size, W*C) at row block
    src[i], gathered by the input index_map (one big contiguous DMA).  The
    source diagonal patch is extracted with a static-slice select tree, and
    each destination column block d is written as (i == d) ? patch : 0, which
    also produces the required zeros off the diagonal.
    """
    i = pl.program_id(0)
    s = src_ref[i]

    acc = row_ref[:, 0:patch_cols]
    for cand in range(1, num_patch):
        acc = jnp.where(s == cand,
                        row_ref[:, cand * patch_cols:(cand + 1) * patch_cols],
                        acc)

    zeros = jnp.zeros_like(acc)
    for d in range(num_patch):
        out_ref[:, d * patch_cols:(d + 1) * patch_cols] = jnp.where(i == d, acc, zeros)


def shuffle_patch_pallas(im, src_idx, patch_size, *, force_row_grid=False):
    """im: (H, W, C), square (H == W). src_idx: int32 (num_patch,)."""
    H, W, C = im.shape
    assert H == W, "reference implementation only works for square images"
    assert H % patch_size == 0, "reference implementation needs H % patch_size == 0"
    num_patch = H // patch_size
    dtype = im.dtype
    itemsize = jnp.dtype(dtype).itemsize
    WC = W * C
    PC = patch_size * C

    # Flatten to (H, W*C): W*C becomes the lane dim -> lane-dense DMAs/stores,
    # ~40x smaller VMEM footprint than the HWC layout with C=3 on lanes.
    im2 = jnp.reshape(im, (H, WC))

    budget = _vmem_budget_bytes()
    image_vmem = _padded_vmem_bytes_2d(H, WC, dtype)
    # Whole-image path footprint: in + out scratch, single-buffered (2x), plus
    # ~1 MiB headroom for internal scratch.
    use_whole_image = (not force_row_grid) and (2 * image_vmem + (1 << 20) <= budget)

    # Pure memory traffic: both paths read + write one image worth of HBM.
    cost = pl.CostEstimate(flops=0, transcendentals=0,
                           bytes_accessed=2 * H * WC * itemsize)

    if use_whole_image:
        grid_spec = pltpu.PrefetchScalarGridSpec(
            num_scalar_prefetch=1,
            grid=(1,),
            in_specs=[pl.BlockSpec(memory_space=pl.ANY)],   # raw HBM ref
            out_specs=pl.BlockSpec(memory_space=pl.ANY),    # raw HBM ref
            scratch_shapes=[
                pltpu.VMEM((H, WC), dtype),                 # image in
                pltpu.VMEM((H, WC), dtype),                 # image out
                pltpu.SemaphoreType.DMA((2,)),
            ],
        )
        kernel = functools.partial(_whole_image_kernel, num_patch=num_patch,
                                   patch_rows=patch_size, patch_cols=PC)
        dims = ("arbitrary",)
    else:
        st = _sublane_tile(dtype)
        assert patch_size % st == 0, (
            f"row-grid fallback needs patch_size % {st} == 0 for dtype {dtype}")
        grid_spec = pltpu.PrefetchScalarGridSpec(
            num_scalar_prefetch=1,
            grid=(num_patch,),
            in_specs=[
                # Full source patch-row gathered via prefetched indices.
                pl.BlockSpec((patch_size, WC), lambda i, src: (src[i], 0)),
            ],
            out_specs=pl.BlockSpec((patch_size, WC), lambda i, src: (i, 0)),
        )
        kernel = functools.partial(_patch_row_kernel, num_patch=num_patch,
                                   patch_cols=PC)
        dims = ("parallel",)   # lets v7x shard the row loop across its 2 TCs

    out2 = pl.pallas_call(
        kernel,
        out_shape=jax.ShapeDtypeStruct((H, WC), dtype),
        grid_spec=grid_spec,
        cost_estimate=cost,
        compiler_params=pltpu.CompilerParams(
            dimension_semantics=dims, vmem_limit_bytes=budget),
    )(src_idx, im2)

    return jnp.reshape(out2, (H, W, C))


class ShufflePatchPallas:
    """JAX/Pallas port of ShufflePatch."""

    def __init__(self, patch_size=8, shuffle_prob=0.5, seed=0):
        self.patch_size = patch_size
        self.shuffle_prob = shuffle_prob
        self._rng = random.Random(seed)             # replicates random.shuffle
        self._np_rng = np.random.RandomState(seed)  # replicates np.random.uniform

    def _source_indices(self, num_patch):
        # Replicates the reference: each diagonal patch index appended
        # `num_patch` times (the inner j loop ignores j), then shuffled; the
        # writeback's last-j-write-wins picks element i*num_patch + (np-1).
        patch_list = [i for i in range(num_patch) for _ in range(num_patch)]
        self._rng.shuffle(patch_list)
        src = [patch_list[i * num_patch + num_patch - 1] for i in range(num_patch)]
        return jnp.asarray(src, dtype=jnp.int32)

    def __call__(self, im, *, force_row_grid=False):
        p = self._np_rng.uniform()
        if p < self.shuffle_prob:
            H, W, C = im.shape
            num_patch = H // self.patch_size
            src_idx = self._source_indices(num_patch)
            return shuffle_patch_pallas(
                im, src_idx, self.patch_size, force_row_grid=force_row_grid
            )
        else:
            return im


if __name__ == "__main__":
    # Small, patch-divisible shapes: 32x32 RGB image, patch_size=8 -> 4x4 patches.
    key = jax.random.PRNGKey(0)
    im = jax.random.uniform(key, (32, 32, 3), dtype=jnp.float32) * 255.0

    # ---- pure-numpy re-implementation of the (buggy) module for checking ----
    im_np = np.asarray(im)
    P = 8
    num_patch = im_np.shape[0] // P
    ref_rng = random.Random(0)
    patch_list = [i for i in range(num_patch) for _ in range(num_patch)]
    ref_rng.shuffle(patch_list)
    ref = np.zeros_like(im_np)
    for i in range(num_patch):
        s = patch_list[i * num_patch + num_patch - 1]
        ref[i * P:(i + 1) * P, i * P:(i + 1) * P, :] = \
            im_np[s * P:(s + 1) * P, s * P:(s + 1) * P, :]

    # Whole-image (single DMA in / single DMA out) fast path.
    out_a = ShufflePatchPallas(patch_size=P, shuffle_prob=1.0, seed=0)(im)
    out_a = jax.block_until_ready(out_a)
    np.testing.assert_allclose(np.asarray(out_a), ref, rtol=0, atol=0)

    # Row-grid fallback path (used automatically for huge images); forced here.
    out_b = ShufflePatchPallas(patch_size=P, shuffle_prob=1.0, seed=0)(
        im, force_row_grid=True
    )
    out_b = jax.block_until_ready(out_b)
    np.testing.assert_allclose(np.asarray(out_b), ref, rtol=0, atol=0)

    # Pass-through branch (shuffle_prob=0.0).
    passthru = ShufflePatchPallas(patch_size=P, shuffle_prob=0.0, seed=0)(im)
    np.testing.assert_allclose(np.asarray(passthru), im_np)

    print("KERNEL_OK")
</pallas_src>

<mosaic_0001>
module attributes {stable_mosaic.version = 11 : i64} {
  func.func @_whole_image_kernel(%arg0: i32, %arg1: memref<4xi32, #tpu.memory_space<smem>>, %arg2: memref<32x96xf32, #tpu.memory_space<any>>, %arg3: memref<32x96xf32, #tpu.memory_space<any>>, %arg4: memref<32x96xf32, #tpu.memory_space<vmem>>, %arg5: memref<32x96xf32, #tpu.memory_space<vmem>>, %arg6: memref<2x!tpu.dma_semaphore, #tpu.memory_space<semaphore_mem>>) attributes {dimension_semantics = [#tpu.dimension_semantics<arbitrary>], iteration_bounds = array<i64: 1>, scalar_prefetch = 1 : i64, scratch_operands = 3 : i64, tpu.core_type = #tpu.core_type<tc>, window_params = [{}, {}]} {
    %c0_i32 = arith.constant 0 : i32
    %0 = tpu.memref_slice %arg6[%c0_i32] : memref<2x!tpu.dma_semaphore, #tpu.memory_space<semaphore_mem>> -> memref<1x!tpu.dma_semaphore, #tpu.memory_space<semaphore_mem>>
    %1 = tpu.memref_squeeze %0 : memref<1x!tpu.dma_semaphore, #tpu.memory_space<semaphore_mem>> -> memref<!tpu.dma_semaphore, #tpu.memory_space<semaphore_mem>>
    tpu.enqueue_dma source(%arg2 : memref<32x96xf32, #tpu.memory_space<any>>) target(%arg4 : memref<32x96xf32, #tpu.memory_space<vmem>>) target_semaphore(%1 : memref<!tpu.dma_semaphore, #tpu.memory_space<semaphore_mem>>)
    %c0_i32_0 = arith.constant 0 : i32
    %2 = tpu.memref_slice %arg6[%c0_i32_0] : memref<2x!tpu.dma_semaphore, #tpu.memory_space<semaphore_mem>> -> memref<1x!tpu.dma_semaphore, #tpu.memory_space<semaphore_mem>>
    %3 = tpu.memref_squeeze %2 : memref<1x!tpu.dma_semaphore, #tpu.memory_space<semaphore_mem>> -> memref<!tpu.dma_semaphore, #tpu.memory_space<semaphore_mem>>
    tpu.wait_dma2 semaphore(%3 : memref<!tpu.dma_semaphore, #tpu.memory_space<semaphore_mem>>) src(%arg2 : memref<32x96xf32, #tpu.memory_space<any>>) dst(%arg4 : memref<32x96xf32, #tpu.memory_space<vmem>>)
    %cst = arith.constant 0.000000e+00 : f32
    %4 = vector.broadcast %cst : f32 to vector<32x96xf32>
    %c0 = arith.constant 0 : index
    %c0_1 = arith.constant 0 : index
    %5 = vector.load %arg5[%c0, %c0_1] : memref<32x96xf32, #tpu.memory_space<vmem>>, vector<32x96xf32>
    tpu.vector_store %arg5[%c0, %c0_1], %4 {strides = array<i32>} : memref<32x96xf32, #tpu.memory_space<vmem>>, vector<32x96xf32>,
    %c0_2 = arith.constant 0 : index
    %6 = memref.load %arg1[%c0_2] : memref<4xi32, #tpu.memory_space<smem>>
    %c0_3 = arith.constant 0 : index
    %c0_4 = arith.constant 0 : index
    %7 = vector.load %arg4[%c0_3, %c0_4] : memref<32x96xf32, #tpu.memory_space<vmem>>, vector<8x24xf32>
    %c8 = arith.constant 8 : index
    %c24 = arith.constant 24 : index
    %8 = vector.load %arg4[%c8, %c24] : memref<32x96xf32, #tpu.memory_space<vmem>>, vector<8x24xf32>
    %c1_i32 = arith.constant 1 : i32
    %9 = arith.cmpi eq, %6, %c1_i32 : i32
    %10 = arith.select %9, %8, %7 : vector<8x24xf32>
    %c16 = arith.constant 16 : index
    %c48 = arith.constant 48 : index
    %11 = vector.load %arg4[%c16, %c48] : memref<32x96xf32, #tpu.memory_space<vmem>>, vector<8x24xf32>
    %c2_i32 = arith.constant 2 : i32
    %12 = arith.cmpi eq, %6, %c2_i32 : i32
    %13 = arith.select %12, %11, %10 : vector<8x24xf32>
    %c24_5 = arith.constant 24 : index
    %c72 = arith.constant 72 : index
    %14 = vector.load %arg4[%c24_5, %c72] : memref<32x96xf32, #tpu.memory_space<vmem>>, vector<8x24xf32>
    %c3_i32 = arith.constant 3 : i32
    %15 = arith.cmpi eq, %6, %c3_i32 : i32
    %16 = arith.select %15, %14, %13 : vector<8x24xf32>
    %c0_6 = arith.constant 0 : index
    %c0_7 = arith.constant 0 : index
    %17 = vector.load %arg5[%c0_6, %c0_7] : memref<32x96xf32, #tpu.memory_space<vmem>>, vector<8x24xf32>
    tpu.vector_store %arg5[%c0_6, %c0_7], %16 {strides = array<i32>} : memref<32x96xf32, #tpu.memory_space<vmem>>, vector<8x24xf32>,
    %c1 = arith.constant 1 : index
    %18 = memref.load %arg1[%c1] : memref<4xi32, #tpu.memory_space<smem>>
    %c0_8 = arith.constant 0 : index
    %c0_9 = arith.constant 0 : index
    %19 = vector.load %arg4[%c0_8, %c0_9] : memref<32x96xf32, #tpu.memory_space<vmem>>, vector<8x24xf32>
    %c8_10 = arith.constant 8 : index
    %c24_11 = arith.constant 24 : index
    %20 = vector.load %arg4[%c8_10, %c24_11] : memref<32x96xf32, #tpu.memory_space<vmem>>, vector<8x24xf32>
    %c1_i32_12 = arith.constant 1 : i32
    %21 = arith.cmpi eq, %18, %c1_i32_12 : i32
    %22 = arith.select %21, %20, %19 : vector<8x24xf32>
    %c16_13 = arith.constant 16 : index
    %c48_14 = arith.constant 48 : index
    %23 = vector.load %arg4[%c16_13, %c48_14] : memref<32x96xf32, #tpu.memory_space<vmem>>, vector<8x24xf32>
    %c2_i32_15 = arith.constant 2 : i32
    %24 = arith.cmpi eq, %18, %c2_i32_15 : i32
    %25 = arith.select %24, %23, %22 : vector<8x24xf32>
    %c24_16 = arith.constant 24 : index
    %c72_17 = arith.constant 72 : index
    %26 = vector.load %arg4[%c24_16, %c72_17] : memref<32x96xf32, #tpu.memory_space<vmem>>, vector<8x24xf32>
    %c3_i32_18 = arith.constant 3 : i32
    %27 = arith.cmpi eq, %18, %c3_i32_18 : i32
    %28 = arith.select %27, %26, %25 : vector<8x24xf32>
    %c8_19 = arith.constant 8 : index
    %c24_20 = arith.constant 24 : index
    %29 = vector.load %arg5[%c8_19, %c24_20] : memref<32x96xf32, #tpu.memory_space<vmem>>, vector<8x24xf32>
    tpu.vector_store %arg5[%c8_19, %c24_20], %28 {strides = array<i32>} : memref<32x96xf32, #tpu.memory_space<vmem>>, vector<8x24xf32>,
    %c2 = arith.constant 2 : index
    %30 = memref.load %arg1[%c2] : memref<4xi32, #tpu.memory_space<smem>>
    %c0_21 = arith.constant 0 : index
    %c0_22 = arith.constant 0 : index
    %31 = vector.load %arg4[%c0_21, %c0_22] : memref<32x96xf32, #tpu.memory_space<vmem>>, vector<8x24xf32>
    %c8_23 = arith.constant 8 : index
    %c24_24 = arith.constant 24 : index
    %32 = vector.load %arg4[%c8_23, %c24_24] : memref<32x96xf32, #tpu.memory_space<vmem>>, vector<8x24xf32>
    %c1_i32_25 = arith.constant 1 : i32
    %33 = arith.cmpi eq, %30, %c1_i32_25 : i32
    %34 = arith.select %33, %32, %31 : vector<8x24xf32>
    %c16_26 = arith.constant 16 : index
    %c48_27 = arith.constant 48 : index
    %35 = vector.load %arg4[%c16_26, %c48_27] : memref<32x96xf32, #tpu.memory_space<vmem>>, vector<8x24xf32>
    %c2_i32_28 = arith.constant 2 : i32
    %36 = arith.cmpi eq, %30, %c2_i32_28 : i32
    %37 = arith.select %36, %35, %34 : vector<8x24xf32>
    %c24_29 = arith.constant 24 : index
    %c72_30 = arith.constant 72 : index
    %38 = vector.load %arg4[%c24_29, %c72_30] : memref<32x96xf32, #tpu.memory_space<vmem>>, vector<8x24xf32>
    %c3_i32_31 = arith.constant 3 : i32
    %39 = arith.cmpi eq, %30, %c3_i32_31 : i32
    %40 = arith.select %39, %38, %37 : vector<8x24xf32>
    %c16_32 = arith.constant 16 : index
    %c48_33 = arith.constant 48 : index
    %41 = vector.load %arg5[%c16_32, %c48_33] : memref<32x96xf32, #tpu.memory_space<vmem>>, vector<8x24xf32>
    tpu.vector_store %arg5[%c16_32, %c48_33], %40 {strides = array<i32>} : memref<32x96xf32, #tpu.memory_space<vmem>>, vector<8x24xf32>,
    %c3 = arith.constant 3 : index
    %42 = memref.load %arg1[%c3] : memref<4xi32, #tpu.memory_space<smem>>
    %c0_34 = arith.constant 0 : index
    %c0_35 = arith.constant 0 : index
    %43 = vector.load %arg4[%c0_34, %c0_35] : memref<32x96xf32, #tpu.memory_space<vmem>>, vector<8x24xf32>
    %c8_36 = arith.constant 8 : index
    %c24_37 = arith.constant 24 : index
    %44 = vector.load %arg4[%c8_36, %c24_37] : memref<32x96xf32, #tpu.memory_space<vmem>>, vector<8x24xf32>
    %c1_i32_38 = arith.constant 1 : i32
    %45 = arith.cmpi eq, %42, %c1_i32_38 : i32
    %46 = arith.select %45, %44, %43 : vector<8x24xf32>
    %c16_39 = arith.constant 16 : index
    %c48_40 = arith.constant 48 : index
    %47 = vector.load %arg4[%c16_39, %c48_40] : memref<32x96xf32, #tpu.memory_space<vmem>>, vector<8x24xf32>
    %c2_i32_41 = arith.constant 2 : i32
    %48 = arith.cmpi eq, %42, %c2_i32_41 : i32
    %49 = arith.select %48, %47, %46 : vector<8x24xf32>
    %c24_42 = arith.constant 24 : index
    %c72_43 = arith.constant 72 : index
    %50 = vector.load %arg4[%c24_42, %c72_43] : memref<32x96xf32, #tpu.memory_space<vmem>>, vector<8x24xf32>
    %c3_i32_44 = arith.constant 3 : i32
    %51 = arith.cmpi eq, %42, %c3_i32_44 : i32
    %52 = arith.select %51, %50, %49 : vector<8x24xf32>
    %c24_45 = arith.constant 24 : index
    %c72_46 = arith.constant 72 : index
    %53 = vector.load %arg5[%c24_45, %c72_46] : memref<32x96xf32, #tpu.memory_space<vmem>>, vector<8x24xf32>
    tpu.vector_store %arg5[%c24_45, %c72_46], %52 {strides = array<i32>} : memref<32x96xf32, #tpu.memory_space<vmem>>, vector<8x24xf32>,
    %c1_i32_47 = arith.constant 1 : i32
    %54 = tpu.memref_slice %arg6[%c1_i32_47] : memref<2x!tpu.dma_semaphore, #tpu.memory_space<semaphore_mem>> -> memref<1x!tpu.dma_semaphore, #tpu.memory_space<semaphore_mem>>
    %55 = tpu.memref_squeeze %54 : memref<1x!tpu.dma_semaphore, #tpu.memory_space<semaphore_mem>> -> memref<!tpu.dma_semaphore, #tpu.memory_space<semaphore_mem>>
    tpu.enqueue_dma source(%arg5 : memref<32x96xf32, #tpu.memory_space<vmem>>) target(%arg3 : memref<32x96xf32, #tpu.memory_space<any>>) target_semaphore(%55 : memref<!tpu.dma_semaphore, #tpu.memory_space<semaphore_mem>>)
    %c1_i32_48 = arith.constant 1 : i32
    %56 = tpu.memref_slice %arg6[%c1_i32_48] : memref<2x!tpu.dma_semaphore, #tpu.memory_space<semaphore_mem>> -> memref<1x!tpu.dma_semaphore, #tpu.memory_space<semaphore_mem>>
    %57 = tpu.memref_squeeze %56 : memref<1x!tpu.dma_semaphore, #tpu.memory_space<semaphore_mem>> -> memref<!tpu.dma_semaphore, #tpu.memory_space<semaphore_mem>>
    tpu.wait_dma2 semaphore(%57 : memref<!tpu.dma_semaphore, #tpu.memory_space<semaphore_mem>>) src(%arg5 : memref<32x96xf32, #tpu.memory_space<vmem>>) dst(%arg3 : memref<32x96xf32, #tpu.memory_space<any>>)
    return
  }
}

</mosaic_0001>

<bundles_post_ra>
// kernel: tpu_custom_call.1
= control target key start
LH: loop header
LB: loop body
LE: loop exit
PB: predicated region body
PF: predicated region fallthrough
CT: control target
= control target key end

     0   :  { %s292_s12 = smov [#allocation6]   ;;  %s356_s0 = inlined_call_operand.hbm [shape: s32[4], index: 0, kind: input, shape index: {}]   ;;  %s357_s1 = inlined_call_operand.hbm [shape: f32[32,96], index: 1, kind: input, shape index: {}]   ;;  %s358_s2 = inlined_call_operand.hbm [shape: f32[32,96], index: 2, kind: output, shape index: {}]  }
   0x1   :  { %s8_s11 = sshll.u32 %s356_s0, 4  ;;  %s9_s11 = int_to_ptr.hbm [resolvable:$true] %s8_s11 }
   0x2   :  { %11 = dma.hbm_to_smem %s9_s11, 16, %s292_s12, [#allocation5] }
   0x3   :  { %286 = dma.done.wait [#allocation5], 16 }
   0x4   :  { %287 = vsyncadd [#allocation5], 4294967280 }
   0x5   :  { %14 = sfence }
   0x6   :  { %s22_s15 = sshll.u32 %s357_s1, 4  ;;  %s293_s16 = smov [#allocation2]   ;;  %s23_s15 = int_to_ptr.hbm [resolvable:$true] %s22_s15 }
   0x7   :  { %s24_s17 = sshll.u32 %s293_s16, 4  ;;  %s25_s17 = int_to_ptr.vmem [resolvable:$true] %s24_s17 }
   0x8   :  { %27 = dma.hbm_to_vmem [thread:$0]  %s23_s15, 512, %s25_s17, [#allocation4] }
   0x9   :  { %288 = dma.done.wait [#allocation4], 512 }
   0xa   :  { %289 = vsyncadd [#allocation4], 4294966784  ;;  %v37_v0 = vld [vmem:[#allocation2] sm:$0xff]  ;;  %s294_s18 = smov 24   ;;  %s325_s0 = sld [smem:[#allocation6]]  ;;  %v38_v3 = vld [vmem:[#allocation2 + $0x8] sm:$0xff] }
   0xb   :  { %44 = vrot.lane.b32.xlu0 %v37_v0, %s294_s18  ;;  %120 = vrot.lane.b32.xlu1 %v37_v0, %s294_s18  ;;  %s327_s1 = sld [smem:[#allocation6 + $0x2]]  ;;  %v48_v15 = vld [vmem:[#allocation2 + $0x10] sm:$0xff]  ;;  %v58_v25 = vld [vmem:[#allocation2 + $0x18] sm:$0xff]  ;;  %s295_s30 = smov 56   ;;  %vm31_vm9 = vcmask 785408   ;;  %v296_v31 = vmov 0.0  }
   0xc   :  { %s331_s19 = sld [smem:[#allocation6 + $0x1]]  ;;  %32 = vst.msk [vmem:[#allocation3] sm:$0xff] %vm31_vm9, %v296_v31  ;;  %s297_s4 = smov 80   ;;  %vm182_vm13 = vcmask 785984   ;;  %vm72_vm14 = vcmask 195584   ;;  %vm148_vm15 = vcmask 589184  }
   0xd   :  { %s337_s23 = sld [smem:[#allocation6 + $0x3]]  ;;  %33 = vst.msk [vmem:[#allocation3 + $0x8] sm:$0xff] %vm31_vm9, %v296_v31  ;;  %s298_s6 = smov 104  }
   0xe   :  { %34 = vst.msk [vmem:[#allocation3 + $0x10] sm:$0xff] %vm31_vm9, %v296_v31  ;;  %s299_s8 = smov [#allocation3]   ;;  %s194_s12 = sshll.u32 %s358_s2, 4  ;;  %s195_s12 = int_to_ptr.hbm [resolvable:$true] %s194_s12 }
   0xf   :  { %35 = vst.msk [vmem:[#allocation3 + $0x18] sm:$0xff] %vm31_vm9, %v296_v31  ;;  %s192_s9 = sshll.u32 %s299_s8, 4  ;;  %s193_s9 = int_to_ptr.vmem [resolvable:$true] %s192_s9 }
  0x10   :  { %p39_p0 = scmp.eq.s32.totalorder %s325_s0, 1  ;;  %p49_p4 = scmp.eq.s32.totalorder %s325_s0, 2 }
  0x11   :  { %p115_p1 = scmp.eq.s32.totalorder %s327_s1, 1  ;;  %p125_p6 = scmp.eq.s32.totalorder %s327_s1, 2 }
  0x12   :  { %s40_s20 = scalar_select %p39_p0, 1, 0 }
  0x13   :  { %82 = vrot.lane.b32.xlu0 %v37_v0, %s294_s18  ;;  %158 = vrot.lane.b32.xlu1 %v37_v0, %s294_s18  ;;  %s116_s21 = scalar_select %p115_p1, 1, 0 }
  0x14   :  { %v41_v1 = vstv %s40_s20  ;;  %p77_p2 = scmp.eq.s32.totalorder %s331_s19, 1  ;;  %p153_p3 = scmp.eq.s32.totalorder %s337_s23, 1 }
  0x15   :  { %v117_v2 = vstv %s116_s21  ;;  %vm42_vm0 = vcmp.eq.s32.totalorder %v41_v1, 1  ;;  %s50_s25 = scalar_select %p49_p4, 1, 0 }
  0x16   :  { %vm118_vm1 = vcmp.eq.s32.totalorder %v117_v2, 1  ;;  %s78_s22 = scalar_select %p77_p2, 1, 0 }
  0x17   :  { %s154_s24 = scalar_select %p153_p3, 1, 0  ;;  %v51_v14 = vstv %s50_s25 }
  0x18   :  { %v79_v8 = vstv %s78_s22  ;;  %p87_p5 = scmp.eq.s32.totalorder %s331_s19, 2  ;;  %vm52_vm4 = vcmp.eq.s32.totalorder %v51_v14, 1  ;;  %p59_p7 = scmp.eq.s32.totalorder %s325_s0, 3 }
  0x19   :  { %vm80_vm2 = vcmp.eq.s32.totalorder %v79_v8, 1  ;;  %v155_v12 = vstv %s154_s24  ;;  %s126_s27 = scalar_select %p125_p6, 1, 0 }
  0x1a   :  { %vm156_vm3 = vcmp.eq.s32.totalorder %v155_v12, 1  ;;  %s88_s26 = scalar_select %p87_p5, 1, 0 }
  0x1b   :  { %v127_v21 = vstv %s126_s27  ;;  %s60_s28 = scalar_select %p59_p7, 1, 0 }
  0x1c   :  { %v89_v18 = vstv %s88_s26  ;;  %vm128_vm6 = vcmp.eq.s32.totalorder %v127_v21, 1  ;;  %p163_p8 = scmp.eq.s32.totalorder %s337_s23, 2  ;;  %p97_p9 = scmp.eq.s32.totalorder %s331_s19, 3 }
  0x1d   :  { %vm90_vm5 = vcmp.eq.s32.totalorder %v89_v18, 1  ;;  %v61_v24 = vstv %s60_s28  ;;  %p135_p10 = scmp.eq.s32.totalorder %s327_s1, 3  ;;  %p173_p11 = scmp.eq.s32.totalorder %s337_s23, 3 }
  0x1e   :  { %vm62_vm7 = vcmp.eq.s32.totalorder %v61_v24, 1  ;;  %s164_s29 = scalar_select %p163_p8, 1, 0 }
  0x1f   :  { %s98_s3 = scalar_select %p97_p9, 1, 0 }
  0x20   :  { %v165_v28 = vstv %s164_s29  ;;  %s136_s5 = scalar_select %p135_p10, 1, 0 }
  0x21   :  { %vm166_vm8 = vcmp.eq.s32.totalorder %v165_v28, 1  ;;  %v99_v32 = vstv %s98_s3  ;;  %s174_s7 = scalar_select %p173_p11, 1, 0 }
  0x22   :  { %vm100_vm10 = vcmp.eq.s32.totalorder %v99_v32, 1  ;;  %v137_v35 = vstv %s136_s5 }
  0x23   :  { %vm138_vm11 = vcmp.eq.s32.totalorder %v137_v35, 1  ;;  %v175_v38 = vstv %s174_s7 }
  0x24   :  { %vm176_vm12 = vcmp.eq.s32.totalorder %v175_v38, 1 }
  0x7d   :  { %v45_v4 = vpop.permute.xlu0 %44  ;;  %v121_v5 = vpop.permute.xlu1 %120 }
  0x7e   :  { %v47_v6 = vsel %vm42_vm0, %v38_v3, %v45_v4  ;;  %v123_v7 = vsel %vm118_vm1, %v38_v3, %v121_v5  ;;  %vm110_vm0 = vcmask 392384  }
  0x7f   :  { %54 = vrot.lane.b32.xlu2 %v47_v6, %s294_s18  ;;  %130 = vrot.lane.b32.xlu0 %v123_v7, %s294_s18 }
  0x85   :  { %v83_v9 = vpop.permute.xlu0 %82  ;;  %v159_v11 = vpop.permute.xlu1 %158 }
  0x86   :  { %v85_v10 = vsel %vm80_vm2, %v38_v3, %v83_v9  ;;  %v161_v13 = vsel %vm156_vm3, %v38_v3, %v159_v11 }
  0x87   :  { %92 = vrot.lane.b32.xlu2 %v85_v10, %s294_s18  ;;  %168 = vrot.lane.b32.xlu1 %v161_v13, %s294_s18 }
  0xd9   :  { %v55_v16 = vpop.permute.xlu2 %54 }
  0xda   :  { %v57_v17 = vsel %vm52_vm4, %v48_v15, %v55_v16 }
  0xdb   :  { %64 = vrot.lane.b32.xlu2 %v57_v17, %s294_s18 }
  0xe1   :  { %v93_v19 = vpop.permute.xlu2 %92 }
  0xe2   :  { %v95_v20 = vsel %vm90_vm5, %v48_v15, %v93_v19 }
  0xe3   :  { %102 = vrot.lane.b32.xlu0 %v95_v20, %s294_s18 }
  0xf1   :  { %v131_v22 = vpop.permute.xlu0 %130 }
  0xf2   :  { %v133_v23 = vsel %vm128_vm6, %v48_v15, %v131_v22 }
  0xf3   :  { %140 = vrot.lane.b32.xlu1 %v133_v23, %s294_s18 }
  0xf9   :  { %v169_v29 = vpop.permute.xlu1 %168 }
  0xfa   :  { %v171_v30 = vsel %vm166_vm8, %v48_v15, %v169_v29 }
  0xfb   :  { %178 = vrot.lane.b32.xlu2 %v171_v30, %s294_s18 }
 0x135   :  { %v65_v26 = vpop.permute.xlu2 %64 }
 0x136   :  { %v67_v27 = vsel %vm62_vm7, %v58_v25, %v65_v26 }
 0x137   :  { %69 = vrot.lane.b32.xlu0 %v67_v27, %s295_s30 }
 0x155   :  { %v103_v33 = vpop.permute.xlu0 %102  ;;  %v179_v39 = vpop.permute.xlu2 %178 }
 0x156   :  { %v105_v34 = vsel %vm100_vm10, %v58_v25, %v103_v33  ;;  %v181_v40 = vsel %vm176_vm12, %v58_v25, %v179_v39 }
 0x157   :  { %107 = vrot.lane.b32.xlu1 %v105_v34, %s297_s4  ;;  %183 = vst.msk [vmem:[#allocation3 + $0x18] sm:$0xff] %vm182_vm13, %v181_v40 }
 0x165   :  { %v141_v36 = vpop.permute.xlu1 %140 }
 0x166   :  { %v143_v37 = vsel %vm138_vm11, %v58_v25, %v141_v36 }
 0x167   :  { %145 = vrot.lane.b32.xlu2 %v143_v37, %s298_s6 }
 0x1a9   :  { %v70_v41 = vpop.permute.xlu0 %69 }
 0x1aa   :  { %73 = vst.msk [vmem:[#allocation3] sm:$0xff] %vm72_vm14, %v70_v41 }
 0x1c1   :  { %v146_v42 = vpop.permute.xlu2 %145 }
 0x1c2   :  { %149 = vst.msk [vmem:[#allocation3 + $0x10] sm:$0xff] %vm148_vm15, %v146_v42 }
 0x1c9   :  { %v108_v43 = vpop.permute.xlu1 %107 }
 0x1ca   :  { %111 = vst.msk [vmem:[#allocation3 + $0x8] sm:$0xff] %vm110_vm0, %v108_v43 }
 0x1cb   :  { %197 = dma.vmem_to_hbm [thread:$0]  %s193_s9, 512, %s195_s12, [#allocation4 + $0x1] }
 0x1cc   :  { %290 = dma.done.wait [#allocation4 + $0x1], 512 }
 0x1cd   :  { %291 = vsyncadd [#allocation4 + $0x1], 4294966784 }
 0x1ce   :  { %200 = vsyncmov [#allocation4] }
 0x1d1   :  { %s201_s13 = vpop.sfrf %200 }
 0x1d2   :  { %p216_p12 = scmp.ne.s32.totalorder %s201_s13, 0 }
 0x1d4   :  { %205 = shalt.err (%p216_p12)  }
 0x1d5   :  { %207 = vsyncmov [#allocation4 + $0x1] }
 0x1d8   :  { %s208_s14 = vpop.sfrf %207 }
 0x1d9   :  { %p217_p13 = scmp.ne.s32.totalorder %s208_s14, 0 }
 0x1db   :  { %212 = shalt.err (%p217_p13)  }

</bundles_post_ra>
